<compile_context>
chip_gen: v6e
topology: v6e:2x2x1
jax: 0.10.0
libtpu: 0.0.40
codegen_flags: <defaults>
</compile_context>

<pallas_src>
import math
import functools

import jax
import jax.numpy as jnp
from jax import lax
from jax.experimental import pallas as pl
from jax.experimental.pallas import tpu as pltpu


def _attention_kernel(x_ref, wqkv_ref, bqkv_ref, wo_ref, bo_ref, out_ref, wts_ref,
                      *, batch_tile, seq, hidden, num_heads, head_dim,
                      mxu_dtype, exact_softmax):
    """One batch tile (batch_tile items flattened into the matmul M dim) per step."""
    H = hidden
    x2d = x_ref[...]                                                   # (Bt*S, H)

    # ---- fused Q/K/V projection: one lane-dense (Bt*S,H)x(H,3H) MXU pass -----
    # 1/sqrt(head_dim) is already folded into the Q columns of wqkv / bqkv.
    qkv = jnp.dot(x2d, wqkv_ref[...], preferred_element_type=jnp.float32)
    qkv = qkv + bqkv_ref[...]                                          # (Bt*S, 3H) f32
    qkv_m = qkv.astype(mxu_dtype)        # single slab cast (no-op on the f32 path)

    # ---- per-(batch, head) attention core -------------------------------------
    # batch_tile and num_heads are tiny at these shapes, so a static unroll is
    # fine (live ranges stay small).
    # TODO(synk): switch to lax.fori_loop + pl.ds slices for large num_heads.
    ctx_rows = []
    for b in range(batch_tile):
        r0 = b * seq
        head_ctx = []
        for h in range(num_heads):
            c0 = h * head_dim
            q = qkv_m[r0:r0 + seq, c0:c0 + head_dim]                   # (S, hd)
            k = qkv_m[r0:r0 + seq, H + c0:H + c0 + head_dim]           # (S, hd)
            v = qkv_m[r0:r0 + seq, 2 * H + c0:2 * H + c0 + head_dim]   # (S, hd)

            # Contract on the last dim of both operands -> q @ k.T without an
            # explicit per-head transpose.
            scores = lax.dot_general(q, k, (((1,), (1,)), ((), ())),
                                     preferred_element_type=jnp.float32)  # (S, S)

            # Numerically-stable softmax, f32.
            m = jnp.max(scores, axis=-1, keepdims=True)
            e = jnp.exp(scores - m)
            denom = jnp.sum(e, axis=-1, keepdims=True)
            if exact_softmax:
                probs = e / denom                         # exact f32 normalization
            else:
                probs = e * pl.reciprocal(denom, approx=True)   # EUP slot (fast path)

            if wts_ref is not None:
                wts_ref[b, h] = probs.astype(wts_ref.dtype)

            head_ctx.append(jnp.dot(probs.astype(mxu_dtype), v,
                                    preferred_element_type=jnp.float32))  # (S, hd)

        ctx_rows.append(head_ctx[0] if num_heads == 1
                        else jnp.concatenate(head_ctx, axis=1))        # (S, H)

    ctx = ctx_rows[0] if batch_tile == 1 else jnp.concatenate(ctx_rows, axis=0)

    # ---- single fused output projection (K = H), bias added once --------------
    out = jnp.dot(ctx.astype(mxu_dtype), wo_ref[...],
                  preferred_element_type=jnp.float32) + bo_ref[...]
    out_ref[...] = out.astype(out_ref.dtype)


def prepare_params(params, num_heads, *, mxu_dtype=jnp.float32):
    """One-time weight prep (hoisted out of the per-call path).

    Returns (w_qkv (H,3H), b_qkv (1,3H), wo_t (H,H), bo (1,H)) with the softmax
    scale 1/sqrt(head_dim) folded into the Q columns.
    """
    wq, bq, wk, bk, wv, bv, wo, bo = params
    H = wq.shape[0]
    hd = H // num_heads
    scale = 1.0 / math.sqrt(hd)
    w_qkv = jnp.concatenate([wq.T * scale, wk.T, wv.T], axis=1).astype(mxu_dtype)
    b_qkv = jnp.concatenate([bq * scale, bk, bv]).reshape(1, 3 * H).astype(jnp.float32)
    wo_t = wo.T.astype(mxu_dtype)
    bo_r = bo.reshape(1, H).astype(jnp.float32)
    return w_qkv, b_qkv, wo_t, bo_r


def attention_forward(hidden_states, fused_params, num_heads, *,
                      mxu_dtype=jnp.float32, vis=True,
                      weights_dtype=jnp.float32, batch_tile=None):
    """Multi-head self-attention matching PyTorch Attention.forward (eval mode)."""
    w_qkv, b_qkv, wo_t, bo_r = fused_params
    B, S, H = hidden_states.shape
    nh = num_heads
    hd = H // nh
    assert nh * hd == H

    # How many batch items to flatten into one grid step (fills the MXU M dim
    # and amortizes per-step overhead). Must divide B.
    if batch_tile is None:
        row_target = 512
        batch_tile = 1
        for d in range(1, B + 1):
            if B % d == 0 and d * S <= row_target:
                batch_tile = d
    assert B % batch_tile == 0
    grid = (B // batch_tile,)

    # Wrapper-side reshape (metadata-only): batch rows become the matmul M dim.
    x2d = hidden_states.reshape(B * S, H).astype(mxu_dtype)

    kernel_body = functools.partial(
        _attention_kernel,
        batch_tile=batch_tile, seq=S, hidden=H, num_heads=nh, head_dim=hd,
        mxu_dtype=mxu_dtype, exact_softmax=(mxu_dtype == jnp.float32))

    if vis:
        kernel = kernel_body
        out_shape = (jax.ShapeDtypeStruct((B * S, H), jnp.float32),
                     jax.ShapeDtypeStruct((B, nh, S, S), weights_dtype))
        out_specs = [pl.BlockSpec((batch_tile * S, H), lambda i: (i, 0)),
                     pl.BlockSpec((batch_tile, nh, S, S), lambda i: (i, 0, 0, 0))]
    else:
        def kernel(x_ref, wqkv_ref, bqkv_ref, wo_ref, bo_ref, out_ref):
            kernel_body(x_ref, wqkv_ref, bqkv_ref, wo_ref, bo_ref, out_ref, None)
        out_shape = jax.ShapeDtypeStruct((B * S, H), jnp.float32)
        out_specs = pl.BlockSpec((batch_tile * S, H), lambda i: (i, 0))

    # VMEM budget from the actual block footprint (double-buffered blocks +
    # resident weights + in-kernel intermediates), clamped to [32 MiB, 96 MiB].
    # TODO(synk): on v7x keep this under ~56 MiB of its 64 MiB VMEM.
    w_item = jnp.dtype(mxu_dtype).itemsize
    wts_item = jnp.dtype(weights_dtype).itemsize
    block_bytes = (
        2 * batch_tile * S * H * w_item                       # x blocks
        + 2 * batch_tile * S * H * 4                          # out blocks
        + (2 * batch_tile * nh * S * S * wts_item if vis else 0)
        + 2 * (H * 3 * H + H * H) * w_item + 2 * 8 * H * 4    # weights + biases
        + 2 * batch_tile * S * 3 * H * 4                      # qkv slab + cast copy
        + batch_tile * S * H * 4                              # ctx
    )
    vmem_limit = int(min(max(32 * 1024 * 1024, 2 * block_bytes), 96 * 1024 * 1024))

    result = pl.pallas_call(
        kernel,
        out_shape=out_shape,
        grid_spec=pltpu.PrefetchScalarGridSpec(
            num_scalar_prefetch=0,
            grid=grid,
            in_specs=[
                pl.BlockSpec((batch_tile * S, H), lambda i: (i, 0)),  # x rows
                # Weights / biases: constant block index -> VMEM-resident across
                # the whole grid (no re-DMA after the first step).
                pl.BlockSpec((H, 3 * H), lambda i: (0, 0)),           # fused W_qkv
                pl.BlockSpec((1, 3 * H), lambda i: (0, 0)),           # fused b_qkv
                pl.BlockSpec((H, H), lambda i: (0, 0)),               # W_out^T
                pl.BlockSpec((1, H), lambda i: (0, 0)),               # b_out
            ],
            out_specs=out_specs,
        ),
        compiler_params=pltpu.CompilerParams(
            dimension_semantics=("parallel",),
            vmem_limit_bytes=vmem_limit,
        ),
    )(x2d, w_qkv, b_qkv, wo_t, bo_r)

    if vis:
        out2d, wts = result
    else:
        out2d, wts = result, None
    return out2d.reshape(B, S, H), wts


def init_params(key, hidden_size):
    """Deterministic init of the 4 Linear layers (query, key, value, out)."""
    ks = jax.random.split(key, 8)
    scale = 1.0 / math.sqrt(hidden_size)

    def lin(kw, kb):
        w = jax.random.uniform(kw, (hidden_size, hidden_size),
                               jnp.float32, -scale, scale)
        b = jax.random.uniform(kb, (hidden_size,), jnp.float32, -scale, scale)
        return w, b

    wq, bq = lin(ks[0], ks[1])
    wk, bk = lin(ks[2], ks[3])
    wv, bv = lin(ks[4], ks[5])
    wo, bo = lin(ks[6], ks[7])
    return (wq, bq, wk, bk, wv, bv, wo, bo)


def reference_attention(x, params, num_heads):
    """Pure-JAX reference mirroring the PyTorch forward (eval mode, vis=True)."""
    wq, bq, wk, bk, wv, bv, wo, bo = params
    B, S, H = x.shape
    nh = num_heads
    hd = H // nh
    q = x @ wq.T + bq
    k = x @ wk.T + bk
    v = x @ wv.T + bv

    def split(t):
        return t.reshape(B, S, nh, hd).transpose(0, 2, 1, 3)

    q, k, v = split(q), split(k), split(v)
    scores = jnp.einsum('bhqd,bhkd->bhqk', q, k) / math.sqrt(hd)
    probs = jax.nn.softmax(scores, axis=-1)
    ctx = jnp.einsum('bhqk,bhkd->bhqd', probs, v)
    ctx = ctx.transpose(0, 2, 1, 3).reshape(B, S, H)
    out = ctx @ wo.T + bo
    return out, probs


if __name__ == "__main__":
    # Small config consistent with the module: hidden_size=32, num_heads=4 -> head_dim=8
    batch, seq_len, hidden_size, num_heads = 2, 8, 32, 4

    key = jax.random.PRNGKey(0)
    k_x, k_p = jax.random.split(key)
    x = jax.random.normal(k_x, (batch, seq_len, hidden_size), jnp.float32)
    params = init_params(k_p, hidden_size)

    out_ref, wts_ref = reference_attention(x, params, num_heads)

    # --- f32 MXU path (exact softmax division) -------------------------------
    fused_f32 = prepare_params(params, num_heads, mxu_dtype=jnp.float32)
    out, wts = attention_forward(x, fused_f32, num_heads,
                                 mxu_dtype=jnp.float32, vis=True)
    out = jax.block_until_ready(out)
    wts = jax.block_until_ready(wts)
    assert out.shape == (batch, seq_len, hidden_size)
    assert wts.shape == (batch, num_heads, seq_len, seq_len)
    assert jnp.allclose(out, out_ref, atol=5e-3, rtol=5e-3)
    assert jnp.allclose(wts, wts_ref, atol=5e-3, rtol=5e-3)

    # --- vis=False path (no attention-weights output / HBM writeback) --------
    out_nv, wts_nv = attention_forward(x, fused_f32, num_heads,
                                       mxu_dtype=jnp.float32, vis=False)
    out_nv = jax.block_until_ready(out_nv)
    assert wts_nv is None
    assert jnp.allclose(out_nv, out_ref, atol=5e-3, rtol=5e-3)

    # --- bf16 MXU path (fast path on all gens; softmax stays f32) ------------
    fused_bf16 = prepare_params(params, num_heads, mxu_dtype=jnp.bfloat16)
    out_bf, wts_bf = attention_forward(x, fused_bf16, num_heads,
                                       mxu_dtype=jnp.bfloat16, vis=True)
    out_bf = jax.block_until_ready(out_bf)
    wts_bf = jax.block_until_ready(wts_bf)
    assert jnp.allclose(out_bf, out_ref, atol=5e-2, rtol=5e-2)
    assert jnp.allclose(wts_bf, wts_ref, atol=5e-2, rtol=5e-2)

    print("KERNEL_OK")
</pallas_src>

<mosaic_0001>
module attributes {stable_mosaic.version = 11 : i64} {
  func.func @_attention_kernel(%arg0: i32, %arg1: memref<16x32xf32, #tpu.memory_space<vmem>>, %arg2: memref<32x96xf32, #tpu.memory_space<vmem>>, %arg3: memref<1x96xf32, #tpu.memory_space<vmem>>, %arg4: memref<32x32xf32, #tpu.memory_space<vmem>>, %arg5: memref<1x32xf32, #tpu.memory_space<vmem>>, %arg6: memref<16x32xf32, #tpu.memory_space<vmem>>, %arg7: memref<2x4x8x8xf32, #tpu.memory_space<vmem>>) attributes {dimension_semantics = [#tpu.dimension_semantics<parallel>], iteration_bounds = array<i64: 1>, scalar_prefetch = 0 : i64, scratch_operands = 0 : i64, tpu.core_type = #tpu.core_type<tc>, window_params = [{transform_indices = @transform_0, window_bounds = array<i64: 16, 32>}, {pipeline_mode = #tpu.pipeline_mode<synchronous>, transform_indices = @transform_1, window_bounds = array<i64: 32, 96>}, {pipeline_mode = #tpu.pipeline_mode<synchronous>, transform_indices = @transform_2, window_bounds = array<i64: 1, 96>}, {pipeline_mode = #tpu.pipeline_mode<synchronous>, transform_indices = @transform_3, window_bounds = array<i64: 32, 32>}, {pipeline_mode = #tpu.pipeline_mode<synchronous>, transform_indices = @transform_4, window_bounds = array<i64: 1, 32>}, {transform_indices = @transform_5, window_bounds = array<i64: 16, 32>}, {transform_indices = @transform_6, window_bounds = array<i64: 2, 4, 8, 8>}]} {
    %c0 = arith.constant 0 : index
    %c0_0 = arith.constant 0 : index
    %0 = vector.load %arg1[%c0, %c0_0] : memref<16x32xf32, #tpu.memory_space<vmem>>, vector<16x32xf32>
    %c0_1 = arith.constant 0 : index
    %c0_2 = arith.constant 0 : index
    %1 = vector.load %arg2[%c0_1, %c0_2] : memref<32x96xf32, #tpu.memory_space<vmem>>, vector<32x96xf32>
    %cst = arith.constant dense<0.000000e+00> : vector<16x96xf32>
    %2 = tpu.matmul %0, %1, %cst {dimension_numbers = #tpu.dot_dimension_numbers<[1], [0], [0], [1], [0, 0, 1, 1], [], []>} : vector<16x32xf32>, vector<32x96xf32>, vector<16x96xf32> -> vector<16x96xf32>
    %c0_3 = arith.constant 0 : index
    %c0_4 = arith.constant 0 : index
    %3 = vector.load %arg3[%c0_3, %c0_4] : memref<1x96xf32, #tpu.memory_space<vmem>>, vector<1x96xf32>
    %4 = vector.broadcast %3 : vector<1x96xf32> to vector<16x96xf32>
    %5 = arith.addf %2, %4 : vector<16x96xf32>
    %6 = vector.extract_strided_slice %5 {offsets = [0, 0], sizes = [8, 8], strides = [1, 1]} : vector<16x96xf32> to vector<8x8xf32>
    %7 = vector.extract_strided_slice %5 {offsets = [0, 32], sizes = [8, 8], strides = [1, 1]} : vector<16x96xf32> to vector<8x8xf32>
    %8 = vector.extract_strided_slice %5 {offsets = [0, 64], sizes = [8, 8], strides = [1, 1]} : vector<16x96xf32> to vector<8x8xf32>
    %cst_5 = arith.constant dense<0.000000e+00> : vector<8x8xf32>
    %9 = tpu.matmul %6, %7, %cst_5 {dimension_numbers = #tpu.dot_dimension_numbers<[1], [1], [0], [0], [0, 0, 1, 0], [], []>} : vector<8x8xf32>, vector<8x8xf32>, vector<8x8xf32> -> vector<8x8xf32>
    %cst_6 = arith.constant dense<0xFF800000> : vector<8xf32>
    %10 = vector.multi_reduction <maximumf>, %9, %cst_6 [1] : vector<8x8xf32> to vector<8xf32>
    %11 = vector.shape_cast %10 : vector<8xf32> to vector<8x1xf32>
    %12 = vector.broadcast %11 : vector<8x1xf32> to vector<8x8xf32>
    %13 = arith.subf %9, %12 : vector<8x8xf32>
    %14 = math.exp %13 : vector<8x8xf32>
    %cst_7 = arith.constant dense<0.000000e+00> : vector<8xf32>
    %15 = vector.multi_reduction <add>, %14, %cst_7 [1] : vector<8x8xf32> to vector<8xf32>
    %16 = vector.shape_cast %15 : vector<8xf32> to vector<8x1xf32>
    %17 = vector.broadcast %16 : vector<8x1xf32> to vector<8x8xf32>
    %18 = arith.divf %14, %17 : vector<8x8xf32>
    %c0_8 = arith.constant 0 : index
    %c0_9 = arith.constant 0 : index
    %c0_10 = arith.constant 0 : index
    %c0_11 = arith.constant 0 : index
    %19 = vector.load %arg7[%c0_8, %c0_9, %c0_10, %c0_11] : memref<2x4x8x8xf32, #tpu.memory_space<vmem>>, vector<1x1x8x8xf32>
    %20 = vector.shape_cast %19 : vector<1x1x8x8xf32> to vector<8x8xf32>
    %21 = vector.shape_cast %18 : vector<8x8xf32> to vector<1x1x8x8xf32>
    tpu.vector_store %arg7[%c0_8, %c0_9, %c0_10, %c0_11], %21 {strides = array<i32>} : memref<2x4x8x8xf32, #tpu.memory_space<vmem>>, vector<1x1x8x8xf32>,
    %cst_12 = arith.constant dense<0.000000e+00> : vector<8x8xf32>
    %22 = tpu.matmul %18, %8, %cst_12 {dimension_numbers = #tpu.dot_dimension_numbers<[1], [0], [0], [1], [0, 0, 1, 1], [], []>} : vector<8x8xf32>, vector<8x8xf32>, vector<8x8xf32> -> vector<8x8xf32>
    %23 = vector.extract_strided_slice %5 {offsets = [0, 8], sizes = [8, 8], strides = [1, 1]} : vector<16x96xf32> to vector<8x8xf32>
    %24 = vector.extract_strided_slice %5 {offsets = [0, 40], sizes = [8, 8], strides = [1, 1]} : vector<16x96xf32> to vector<8x8xf32>
    %25 = vector.extract_strided_slice %5 {offsets = [0, 72], sizes = [8, 8], strides = [1, 1]} : vector<16x96xf32> to vector<8x8xf32>
    %cst_13 = arith.constant dense<0.000000e+00> : vector<8x8xf32>
    %26 = tpu.matmul %23, %24, %cst_13 {dimension_numbers = #tpu.dot_dimension_numbers<[1], [1], [0], [0], [0, 0, 1, 0], [], []>} : vector<8x8xf32>, vector<8x8xf32>, vector<8x8xf32> -> vector<8x8xf32>
    %cst_14 = arith.constant dense<0xFF800000> : vector<8xf32>
    %27 = vector.multi_reduction <maximumf>, %26, %cst_14 [1] : vector<8x8xf32> to vector<8xf32>
    %28 = vector.shape_cast %27 : vector<8xf32> to vector<8x1xf32>
    %29 = vector.broadcast %28 : vector<8x1xf32> to vector<8x8xf32>
    %30 = arith.subf %26, %29 : vector<8x8xf32>
    %31 = math.exp %30 : vector<8x8xf32>
    %cst_15 = arith.constant dense<0.000000e+00> : vector<8xf32>
    %32 = vector.multi_reduction <add>, %31, %cst_15 [1] : vector<8x8xf32> to vector<8xf32>
    %33 = vector.shape_cast %32 : vector<8xf32> to vector<8x1xf32>
    %34 = vector.broadcast %33 : vector<8x1xf32> to vector<8x8xf32>
    %35 = arith.divf %31, %34 : vector<8x8xf32>
    %c0_16 = arith.constant 0 : index
    %c1 = arith.constant 1 : index
    %c0_17 = arith.constant 0 : index
    %c0_18 = arith.constant 0 : index
    %36 = vector.load %arg7[%c0_16, %c1, %c0_17, %c0_18] : memref<2x4x8x8xf32, #tpu.memory_space<vmem>>, vector<1x1x8x8xf32>
    %37 = vector.shape_cast %36 : vector<1x1x8x8xf32> to vector<8x8xf32>
    %38 = vector.shape_cast %35 : vector<8x8xf32> to vector<1x1x8x8xf32>
    tpu.vector_store %arg7[%c0_16, %c1, %c0_17, %c0_18], %38 {strides = array<i32>} : memref<2x4x8x8xf32, #tpu.memory_space<vmem>>, vector<1x1x8x8xf32>,
    %cst_19 = arith.constant dense<0.000000e+00> : vector<8x8xf32>
    %39 = tpu.matmul %35, %25, %cst_19 {dimension_numbers = #tpu.dot_dimension_numbers<[1], [0], [0], [1], [0, 0, 1, 1], [], []>} : vector<8x8xf32>, vector<8x8xf32>, vector<8x8xf32> -> vector<8x8xf32>
    %40 = vector.extract_strided_slice %5 {offsets = [0, 16], sizes = [8, 8], strides = [1, 1]} : vector<16x96xf32> to vector<8x8xf32>
    %41 = vector.extract_strided_slice %5 {offsets = [0, 48], sizes = [8, 8], strides = [1, 1]} : vector<16x96xf32> to vector<8x8xf32>
    %42 = vector.extract_strided_slice %5 {offsets = [0, 80], sizes = [8, 8], strides = [1, 1]} : vector<16x96xf32> to vector<8x8xf32>
    %cst_20 = arith.constant dense<0.000000e+00> : vector<8x8xf32>
    %43 = tpu.matmul %40, %41, %cst_20 {dimension_numbers = #tpu.dot_dimension_numbers<[1], [1], [0], [0], [0, 0, 1, 0], [], []>} : vector<8x8xf32>, vector<8x8xf32>, vector<8x8xf32> -> vector<8x8xf32>
    %cst_21 = arith.constant dense<0xFF800000> : vector<8xf32>
    %44 = vector.multi_reduction <maximumf>, %43, %cst_21 [1] : vector<8x8xf32> to vector<8xf32>
    %45 = vector.shape_cast %44 : vector<8xf32> to vector<8x1xf32>
    %46 = vector.broadcast %45 : vector<8x1xf32> to vector<8x8xf32>
    %47 = arith.subf %43, %46 : vector<8x8xf32>
    %48 = math.exp %47 : vector<8x8xf32>
    %cst_22 = arith.constant dense<0.000000e+00> : vector<8xf32>
    %49 = vector.multi_reduction <add>, %48, %cst_22 [1] : vector<8x8xf32> to vector<8xf32>
    %50 = vector.shape_cast %49 : vector<8xf32> to vector<8x1xf32>
    %51 = vector.broadcast %50 : vector<8x1xf32> to vector<8x8xf32>
    %52 = arith.divf %48, %51 : vector<8x8xf32>
    %c0_23 = arith.constant 0 : index
    %c2 = arith.constant 2 : index
    %c0_24 = arith.constant 0 : index
    %c0_25 = arith.constant 0 : index
    %53 = vector.load %arg7[%c0_23, %c2, %c0_24, %c0_25] : memref<2x4x8x8xf32, #tpu.memory_space<vmem>>, vector<1x1x8x8xf32>
    %54 = vector.shape_cast %53 : vector<1x1x8x8xf32> to vector<8x8xf32>
    %55 = vector.shape_cast %52 : vector<8x8xf32> to vector<1x1x8x8xf32>
    tpu.vector_store %arg7[%c0_23, %c2, %c0_24, %c0_25], %55 {strides = array<i32>} : memref<2x4x8x8xf32, #tpu.memory_space<vmem>>, vector<1x1x8x8xf32>,
    %cst_26 = arith.constant dense<0.000000e+00> : vector<8x8xf32>
    %56 = tpu.matmul %52, %42, %cst_26 {dimension_numbers = #tpu.dot_dimension_numbers<[1], [0], [0], [1], [0, 0, 1, 1], [], []>} : vector<8x8xf32>, vector<8x8xf32>, vector<8x8xf32> -> vector<8x8xf32>
    %57 = vector.extract_strided_slice %5 {offsets = [0, 24], sizes = [8, 8], strides = [1, 1]} : vector<16x96xf32> to vector<8x8xf32>
    %58 = vector.extract_strided_slice %5 {offsets = [0, 56], sizes = [8, 8], strides = [1, 1]} : vector<16x96xf32> to vector<8x8xf32>
    %59 = vector.extract_strided_slice %5 {offsets = [0, 88], sizes = [8, 8], strides = [1, 1]} : vector<16x96xf32> to vector<8x8xf32>
    %cst_27 = arith.constant dense<0.000000e+00> : vector<8x8xf32>
    %60 = tpu.matmul %57, %58, %cst_27 {dimension_numbers = #tpu.dot_dimension_numbers<[1], [1], [0], [0], [0, 0, 1, 0], [], []>} : vector<8x8xf32>, vector<8x8xf32>, vector<8x8xf32> -> vector<8x8xf32>
    %cst_28 = arith.constant dense<0xFF800000> : vector<8xf32>
    %61 = vector.multi_reduction <maximumf>, %60, %cst_28 [1] : vector<8x8xf32> to vector<8xf32>
    %62 = vector.shape_cast %61 : vector<8xf32> to vector<8x1xf32>
    %63 = vector.broadcast %62 : vector<8x1xf32> to vector<8x8xf32>
    %64 = arith.subf %60, %63 : vector<8x8xf32>
    %65 = math.exp %64 : vector<8x8xf32>
    %cst_29 = arith.constant dense<0.000000e+00> : vector<8xf32>
    %66 = vector.multi_reduction <add>, %65, %cst_29 [1] : vector<8x8xf32> to vector<8xf32>
    %67 = vector.shape_cast %66 : vector<8xf32> to vector<8x1xf32>
    %68 = vector.broadcast %67 : vector<8x1xf32> to vector<8x8xf32>
    %69 = arith.divf %65, %68 : vector<8x8xf32>
    %c0_30 = arith.constant 0 : index
    %c3 = arith.constant 3 : index
    %c0_31 = arith.constant 0 : index
    %c0_32 = arith.constant 0 : index
    %70 = vector.load %arg7[%c0_30, %c3, %c0_31, %c0_32] : memref<2x4x8x8xf32, #tpu.memory_space<vmem>>, vector<1x1x8x8xf32>
    %71 = vector.shape_cast %70 : vector<1x1x8x8xf32> to vector<8x8xf32>
    %72 = vector.shape_cast %69 : vector<8x8xf32> to vector<1x1x8x8xf32>
    tpu.vector_store %arg7[%c0_30, %c3, %c0_31, %c0_32], %72 {strides = array<i32>} : memref<2x4x8x8xf32, #tpu.memory_space<vmem>>, vector<1x1x8x8xf32>,
    %cst_33 = arith.constant dense<0.000000e+00> : vector<8x8xf32>
    %73 = tpu.matmul %69, %59, %cst_33 {dimension_numbers = #tpu.dot_dimension_numbers<[1], [0], [0], [1], [0, 0, 1, 1], [], []>} : vector<8x8xf32>, vector<8x8xf32>, vector<8x8xf32> -> vector<8x8xf32>
    %74 = tpu.concatenate %22, %39, %56, %73 in 1 : vector<8x8xf32>, vector<8x8xf32>, vector<8x8xf32>, vector<8x8xf32> -> vector<8x32xf32>
    %75 = vector.extract_strided_slice %5 {offsets = [8, 0], sizes = [8, 8], strides = [1, 1]} : vector<16x96xf32> to vector<8x8xf32>
    %76 = vector.extract_strided_slice %5 {offsets = [8, 32], sizes = [8, 8], strides = [1, 1]} : vector<16x96xf32> to vector<8x8xf32>
    %77 = vector.extract_strided_slice %5 {offsets = [8, 64], sizes = [8, 8], strides = [1, 1]} : vector<16x96xf32> to vector<8x8xf32>
    %cst_34 = arith.constant dense<0.000000e+00> : vector<8x8xf32>
    %78 = tpu.matmul %75, %76, %cst_34 {dimension_numbers = #tpu.dot_dimension_numbers<[1], [1], [0], [0], [0, 0, 1, 0], [], []>} : vector<8x8xf32>, vector<8x8xf32>, vector<8x8xf32> -> vector<8x8xf32>
    %cst_35 = arith.constant dense<0xFF800000> : vector<8xf32>
    %79 = vector.multi_reduction <maximumf>, %78, %cst_35 [1] : vector<8x8xf32> to vector<8xf32>
    %80 = vector.shape_cast %79 : vector<8xf32> to vector<8x1xf32>
    %81 = vector.broadcast %80 : vector<8x1xf32> to vector<8x8xf32>
    %82 = arith.subf %78, %81 : vector<8x8xf32>
    %83 = math.exp %82 : vector<8x8xf32>
    %cst_36 = arith.constant dense<0.000000e+00> : vector<8xf32>
    %84 = vector.multi_reduction <add>, %83, %cst_36 [1] : vector<8x8xf32> to vector<8xf32>
    %85 = vector.shape_cast %84 : vector<8xf32> to vector<8x1xf32>
    %86 = vector.broadcast %85 : vector<8x1xf32> to vector<8x8xf32>
    %87 = arith.divf %83, %86 : vector<8x8xf32>
    %c1_37 = arith.constant 1 : index
    %c0_38 = arith.constant 0 : index
    %c0_39 = arith.constant 0 : index
    %c0_40 = arith.constant 0 : index
    %88 = vector.load %arg7[%c1_37, %c0_38, %c0_39, %c0_40] : memref<2x4x8x8xf32, #tpu.memory_space<vmem>>, vector<1x1x8x8xf32>
    %89 = vector.shape_cast %88 : vector<1x1x8x8xf32> to vector<8x8xf32>
    %90 = vector.shape_cast %87 : vector<8x8xf32> to vector<1x1x8x8xf32>
    tpu.vector_store %arg7[%c1_37, %c0_38, %c0_39, %c0_40], %90 {strides = array<i32>} : memref<2x4x8x8xf32, #tpu.memory_space<vmem>>, vector<1x1x8x8xf32>,
    %cst_41 = arith.constant dense<0.000000e+00> : vector<8x8xf32>
    %91 = tpu.matmul %87, %77, %cst_41 {dimension_numbers = #tpu.dot_dimension_numbers<[1], [0], [0], [1], [0, 0, 1, 1], [], []>} : vector<8x8xf32>, vector<8x8xf32>, vector<8x8xf32> -> vector<8x8xf32>
    %92 = vector.extract_strided_slice %5 {offsets = [8, 8], sizes = [8, 8], strides = [1, 1]} : vector<16x96xf32> to vector<8x8xf32>
    %93 = vector.extract_strided_slice %5 {offsets = [8, 40], sizes = [8, 8], strides = [1, 1]} : vector<16x96xf32> to vector<8x8xf32>
    %94 = vector.extract_strided_slice %5 {offsets = [8, 72], sizes = [8, 8], strides = [1, 1]} : vector<16x96xf32> to vector<8x8xf32>
    %cst_42 = arith.constant dense<0.000000e+00> : vector<8x8xf32>
    %95 = tpu.matmul %92, %93, %cst_42 {dimension_numbers = #tpu.dot_dimension_numbers<[1], [1], [0], [0], [0, 0, 1, 0], [], []>} : vector<8x8xf32>, vector<8x8xf32>, vector<8x8xf32> -> vector<8x8xf32>
    %cst_43 = arith.constant dense<0xFF800000> : vector<8xf32>
    %96 = vector.multi_reduction <maximumf>, %95, %cst_43 [1] : vector<8x8xf32> to vector<8xf32>
    %97 = vector.shape_cast %96 : vector<8xf32> to vector<8x1xf32>
    %98 = vector.broadcast %97 : vector<8x1xf32> to vector<8x8xf32>
    %99 = arith.subf %95, %98 : vector<8x8xf32>
    %100 = math.exp %99 : vector<8x8xf32>
    %cst_44 = arith.constant dense<0.000000e+00> : vector<8xf32>
    %101 = vector.multi_reduction <add>, %100, %cst_44 [1] : vector<8x8xf32> to vector<8xf32>
    %102 = vector.shape_cast %101 : vector<8xf32> to vector<8x1xf32>
    %103 = vector.broadcast %102 : vector<8x1xf32> to vector<8x8xf32>
    %104 = arith.divf %100, %103 : vector<8x8xf32>
    %c1_45 = arith.constant 1 : index
    %c1_46 = arith.constant 1 : index
    %c0_47 = arith.constant 0 : index
    %c0_48 = arith.constant 0 : index
    %105 = vector.load %arg7[%c1_45, %c1_46, %c0_47, %c0_48] : memref<2x4x8x8xf32, #tpu.memory_space<vmem>>, vector<1x1x8x8xf32>
    %106 = vector.shape_cast %105 : vector<1x1x8x8xf32> to vector<8x8xf32>
    %107 = vector.shape_cast %104 : vector<8x8xf32> to vector<1x1x8x8xf32>
    tpu.vector_store %arg7[%c1_45, %c1_46, %c0_47, %c0_48], %107 {strides = array<i32>} : memref<2x4x8x8xf32, #tpu.memory_space<vmem>>, vector<1x1x8x8xf32>,
    %cst_49 = arith.constant dense<0.000000e+00> : vector<8x8xf32>
    %108 = tpu.matmul %104, %94, %cst_49 {dimension_numbers = #tpu.dot_dimension_numbers<[1], [0], [0], [1], [0, 0, 1, 1], [], []>} : vector<8x8xf32>, vector<8x8xf32>, vector<8x8xf32> -> vector<8x8xf32>
    %109 = vector.extract_strided_slice %5 {offsets = [8, 16], sizes = [8, 8], strides = [1, 1]} : vector<16x96xf32> to vector<8x8xf32>
    %110 = vector.extract_strided_slice %5 {offsets = [8, 48], sizes = [8, 8], strides = [1, 1]} : vector<16x96xf32> to vector<8x8xf32>
    %111 = vector.extract_strided_slice %5 {offsets = [8, 80], sizes = [8, 8], strides = [1, 1]} : vector<16x96xf32> to vector<8x8xf32>
    %cst_50 = arith.constant dense<0.000000e+00> : vector<8x8xf32>
    %112 = tpu.matmul %109, %110, %cst_50 {dimension_numbers = #tpu.dot_dimension_numbers<[1], [1], [0], [0], [0, 0, 1, 0], [], []>} : vector<8x8xf32>, vector<8x8xf32>, vector<8x8xf32> -> vector<8x8xf32>
    %cst_51 = arith.constant dense<0xFF800000> : vector<8xf32>
    %113 = vector.multi_reduction <maximumf>, %112, %cst_51 [1] : vector<8x8xf32> to vector<8xf32>
    %114 = vector.shape_cast %113 : vector<8xf32> to vector<8x1xf32>
    %115 = vector.broadcast %114 : vector<8x1xf32> to vector<8x8xf32>
    %116 = arith.subf %112, %115 : vector<8x8xf32>
    %117 = math.exp %116 : vector<8x8xf32>
    %cst_52 = arith.constant dense<0.000000e+00> : vector<8xf32>
    %118 = vector.multi_reduction <add>, %117, %cst_52 [1] : vector<8x8xf32> to vector<8xf32>
    %119 = vector.shape_cast %118 : vector<8xf32> to vector<8x1xf32>
    %120 = vector.broadcast %119 : vector<8x1xf32> to vector<8x8xf32>
    %121 = arith.divf %117, %120 : vector<8x8xf32>
    %c1_53 = arith.constant 1 : index
    %c2_54 = arith.constant 2 : index
    %c0_55 = arith.constant 0 : index
    %c0_56 = arith.constant 0 : index
    %122 = vector.load %arg7[%c1_53, %c2_54, %c0_55, %c0_56] : memref<2x4x8x8xf32, #tpu.memory_space<vmem>>, vector<1x1x8x8xf32>
    %123 = vector.shape_cast %122 : vector<1x1x8x8xf32> to vector<8x8xf32>
    %124 = vector.shape_cast %121 : vector<8x8xf32> to vector<1x1x8x8xf32>
    tpu.vector_store %arg7[%c1_53, %c2_54, %c0_55, %c0_56], %124 {strides = array<i32>} : memref<2x4x8x8xf32, #tpu.memory_space<vmem>>, vector<1x1x8x8xf32>,
    %cst_57 = arith.constant dense<0.000000e+00> : vector<8x8xf32>
    %125 = tpu.matmul %121, %111, %cst_57 {dimension_numbers = #tpu.dot_dimension_numbers<[1], [0], [0], [1], [0, 0, 1, 1], [], []>} : vector<8x8xf32>, vector<8x8xf32>, vector<8x8xf32> -> vector<8x8xf32>
    %126 = vector.extract_strided_slice %5 {offsets = [8, 24], sizes = [8, 8], strides = [1, 1]} : vector<16x96xf32> to vector<8x8xf32>
    %127 = vector.extract_strided_slice %5 {offsets = [8, 56], sizes = [8, 8], strides = [1, 1]} : vector<16x96xf32> to vector<8x8xf32>
    %128 = vector.extract_strided_slice %5 {offsets = [8, 88], sizes = [8, 8], strides = [1, 1]} : vector<16x96xf32> to vector<8x8xf32>
    %cst_58 = arith.constant dense<0.000000e+00> : vector<8x8xf32>
    %129 = tpu.matmul %126, %127, %cst_58 {dimension_numbers = #tpu.dot_dimension_numbers<[1], [1], [0], [0], [0, 0, 1, 0], [], []>} : vector<8x8xf32>, vector<8x8xf32>, vector<8x8xf32> -> vector<8x8xf32>
    %cst_59 = arith.constant dense<0xFF800000> : vector<8xf32>
    %130 = vector.multi_reduction <maximumf>, %129, %cst_59 [1] : vector<8x8xf32> to vector<8xf32>
    %131 = vector.shape_cast %130 : vector<8xf32> to vector<8x1xf32>
    %132 = vector.broadcast %131 : vector<8x1xf32> to vector<8x8xf32>
    %133 = arith.subf %129, %132 : vector<8x8xf32>
    %134 = math.exp %133 : vector<8x8xf32>
    %cst_60 = arith.constant dense<0.000000e+00> : vector<8xf32>
    %135 = vector.multi_reduction <add>, %134, %cst_60 [1] : vector<8x8xf32> to vector<8xf32>
    %136 = vector.shape_cast %135 : vector<8xf32> to vector<8x1xf32>
    %137 = vector.broadcast %136 : vector<8x1xf32> to vector<8x8xf32>
    %138 = arith.divf %134, %137 : vector<8x8xf32>
    %c1_61 = arith.constant 1 : index
    %c3_62 = arith.constant 3 : index
    %c0_63 = arith.constant 0 : index
    %c0_64 = arith.constant 0 : index
    %139 = vector.load %arg7[%c1_61, %c3_62, %c0_63, %c0_64] : memref<2x4x8x8xf32, #tpu.memory_space<vmem>>, vector<1x1x8x8xf32>
    %140 = vector.shape_cast %139 : vector<1x1x8x8xf32> to vector<8x8xf32>
    %141 = vector.shape_cast %138 : vector<8x8xf32> to vector<1x1x8x8xf32>
    tpu.vector_store %arg7[%c1_61, %c3_62, %c0_63, %c0_64], %141 {strides = array<i32>} : memref<2x4x8x8xf32, #tpu.memory_space<vmem>>, vector<1x1x8x8xf32>,
    %cst_65 = arith.constant dense<0.000000e+00> : vector<8x8xf32>
    %142 = tpu.matmul %138, %128, %cst_65 {dimension_numbers = #tpu.dot_dimension_numbers<[1], [0], [0], [1], [0, 0, 1, 1], [], []>} : vector<8x8xf32>, vector<8x8xf32>, vector<8x8xf32> -> vector<8x8xf32>
    %143 = tpu.concatenate %91, %108, %125, %142 in 1 : vector<8x8xf32>, vector<8x8xf32>, vector<8x8xf32>, vector<8x8xf32> -> vector<8x32xf32>
    %144 = tpu.concatenate %74, %143 in 0 : vector<8x32xf32>, vector<8x32xf32> -> vector<16x32xf32>
    %c0_66 = arith.constant 0 : index
    %c0_67 = arith.constant 0 : index
    %145 = vector.load %arg4[%c0_66, %c0_67] : memref<32x32xf32, #tpu.memory_space<vmem>>, vector<32x32xf32>
    %cst_68 = arith.constant dense<0.000000e+00> : vector<16x32xf32>
    %146 = tpu.matmul %144, %145, %cst_68 {dimension_numbers = #tpu.dot_dimension_numbers<[1], [0], [0], [1], [0, 0, 1, 1], [], []>} : vector<16x32xf32>, vector<32x32xf32>, vector<16x32xf32> -> vector<16x32xf32>
    %c0_69 = arith.constant 0 : index
    %c0_70 = arith.constant 0 : index
    %147 = vector.load %arg5[%c0_69, %c0_70] : memref<1x32xf32, #tpu.memory_space<vmem>>, vector<1x32xf32>
    %148 = vector.broadcast %147 : vector<1x32xf32> to vector<16x32xf32>
    %149 = arith.addf %146, %148 : vector<16x32xf32>
    %c0_71 = arith.constant 0 : index
    %c0_72 = arith.constant 0 : index
    %150 = vector.load %arg6[%c0_71, %c0_72] : memref<16x32xf32, #tpu.memory_space<vmem>>, vector<16x32xf32>
    tpu.vector_store %arg6[%c0_71, %c0_72], %149 {strides = array<i32>} : memref<16x32xf32, #tpu.memory_space<vmem>>, vector<16x32xf32>,
    return
  }
  func.func @transform_0(%arg0: i32) -> (i32, i32) {
    %c0_i32 = arith.constant 0 : i32
    %c0_i32_0 = arith.constant 0 : i32
    return %arg0, %c0_i32 : i32, i32
  }
  func.func @transform_1(%arg0: i32) -> (i32, i32) {
    %c0_i32 = arith.constant 0 : i32
    %c0_i32_0 = arith.constant 0 : i32
    %c0_i32_1 = arith.constant 0 : i32
    return %c0_i32, %c0_i32_0 : i32, i32
  }
  func.func @transform_2(%arg0: i32) -> (i32, i32) {
    %c0_i32 = arith.constant 0 : i32
    %c0_i32_0 = arith.constant 0 : i32
    %c0_i32_1 = arith.constant 0 : i32
    return %c0_i32, %c0_i32_0 : i32, i32
  }
  func.func @transform_3(%arg0: i32) -> (i32, i32) {
    %c0_i32 = arith.constant 0 : i32
    %c0_i32_0 = arith.constant 0 : i32
    %c0_i32_1 = arith.constant 0 : i32
    return %c0_i32, %c0_i32_0 : i32, i32
  }
  func.func @transform_4(%arg0: i32) -> (i32, i32) {
    %c0_i32 = arith.constant 0 : i32
    %c0_i32_0 = arith.constant 0 : i32
    %c0_i32_1 = arith.constant 0 : i32
    return %c0_i32, %c0_i32_0 : i32, i32
  }
  func.func @transform_5(%arg0: i32) -> (i32, i32) {
    %c0_i32 = arith.constant 0 : i32
    %c0_i32_0 = arith.constant 0 : i32
    return %arg0, %c0_i32 : i32, i32
  }
  func.func @transform_6(%arg0: i32) -> (i32, i32, i32, i32) {
    %c0_i32 = arith.constant 0 : i32
    %c0_i32_0 = arith.constant 0 : i32
    %c0_i32_1 = arith.constant 0 : i32
    %c0_i32_2 = arith.constant 0 : i32
    return %arg0, %c0_i32, %c0_i32_0, %c0_i32_1 : i32, i32, i32, i32
  }
}

</mosaic_0001>

<bundles_post_ra>
// kernel: tpu_custom_call.1
= control target key start
LH: loop header
LB: loop body
LE: loop exit
PB: predicated region body
PF: predicated region fallthrough
CT: control target
= control target key end

     0   :  { %12 = vsyncpa [#allocation3], 0  ;;  %s2240_s0 = inlined_call_operand.hbm [shape: f32[16,32], index: 0, kind: input, shape index: {}]   ;;  %s2241_s1 = inlined_call_operand.hbm [shape: f32[32,96], index: 1, kind: input, shape index: {}]   ;;  %s2242_s2 = inlined_call_operand.vmem [shape: f32[1,96], index: 2, kind: input, shape index: {}]   ;;  %s2243_s3 = inlined_call_operand.hbm [shape: f32[32,32], index: 3, kind: input, shape index: {}]   ;;  %s2244_s4 = inlined_call_operand.vmem [shape: f32[1,32], index: 4, kind: input, shape index: {}]   ;;  %s2245_s5 = inlined_call_operand.hbm [shape: f32[16,32], index: 5, kind: output, shape index: {0}]   ;;  %s2246_s6 = inlined_call_operand.hbm [shape: f32[2,4,8,8], index: 6, kind: output, shape index: {1}]  }
   0x1   :  { %13 = vsyncpa [#allocation6], 0 }
   0x2   :  { %14 = vsyncpa [#allocation4], 0 }
   0x3   :  { %15 = vsyncpa [#allocation10], 0  ;;  %s1992_s21 = smov [#allocation5]   ;;  %s1993_s23 = smov [#allocation2]  }
   0x4   :  { %s33_s22 = sshll.u32 %s1992_s21, 4  ;;  %s21_s24 = sshll.u32 %s1993_s23, 4  ;;  %s34_s22 = int_to_ptr.vmem [resolvable:$true] %s33_s22  ;;  %s22_s24 = int_to_ptr.vmem [resolvable:$true] %s21_s24 }
   0x5   :  { %s1892_s25 = scalar_lea.vmem %s34_s22, 512  ;;  %p1897_p1 = scmp.lt.s32.totalorder %s34_s22, %s34_s22 }
   0x6   :  { %p1893_p0 = scmp.ne.s32.totalorder %s34_s22, %s1892_s25  ;;  %p1898_p2 = scmp.lt.s32.totalorder %s1892_s25, %s1892_s25 }
   0x8   :  { %p1899_p3 = por %p1898_p2, %p1897_p1 }
   0xa   :  { %p1900_p4 = pnand %p1899_p3, %p1893_p0 }
   0xc   :  { %1903 = shalt.err (!%p1900_p4)
}
   0xd   :  { %s1994_s26 = smov 128   ;;  %s1995_s27 = smov 8  }
   0xe   :  { %39 = dma.hbm_to_vmem [thread:$0]  %s2241_s1, 512, %s34_s22, [#allocation6], %s1994_s26, %s1994_s26, %s1995_s27  }
   0xf   :  { %s1912_s30 = scalar_lea.vmem %s22_s24, 256  ;;  %p1917_p6 = scmp.lt.s32.totalorder %s22_s24, %s22_s24 }
  0x10   :  { %p1913_p5 = scmp.ne.s32.totalorder %s22_s24, %s1912_s30  ;;  %p1918_p7 = scmp.lt.s32.totalorder %s1912_s30, %s1912_s30 }
  0x12   :  { %p1919_p8 = por %p1918_p7, %p1917_p6 }
  0x14   :  { %p1920_p9 = pnand %p1919_p8, %p1913_p5 }
  0x16   :  { %1923 = shalt.err (!%p1920_p9)
}
  0x17   :  { %27 = dma.hbm_to_vmem [thread:$0]  %s2240_s0, 256, %s22_s24, [#allocation3], %s1994_s26, %s1994_s26, %s1995_s27  }
  0x18   :  { %s1996_s9 = smov [#allocation7]  }
  0x19   :  { %s47_s10 = sshll.u32 %s1996_s9, 4  ;;  %s48_s10 = int_to_ptr.vmem [resolvable:$true] %s47_s10 }
  0x1a   :  { %s1932_s11 = scalar_lea.vmem %s48_s10, 512  ;;  %p1937_p11 = scmp.lt.s32.totalorder %s48_s10, %s48_s10 }
  0x1b   :  { %p1933_p10 = scmp.ne.s32.totalorder %s48_s10, %s1932_s11  ;;  %p1938_p12 = scmp.lt.s32.totalorder %s1932_s11, %s1932_s11 }
  0x1d   :  { %p1939_p13 = por %p1938_p12, %p1937_p11 }
  0x1f   :  { %p1940_p0 = pnand %p1939_p13, %p1933_p10 }
  0x21   :  { %1943 = shalt.err (!%p1940_p0)
}
  0x22   :  { %53 = dma.hbm_to_vmem [thread:$0]  %s2243_s3, 512, %s48_s10, [#allocation6], %s1994_s26, %s1994_s26, %s1995_s27  }
  0x23   :  { %1984 = dma.done.wait [#allocation3], 256  }
  0x24   :  { %1985 = vsyncadd [#allocation3], 4294967040 }
  0x25   :  { %1986 = dma.done.wait [#allocation6], 1024  }
  0x26   :  { %1987 = vsyncadd [#allocation6], 4294966272  ;;  %vm78_vm0 = vcmask 261120   ;;  %v70_v0 = vld [vmem:[#allocation5 + $0x18] sm:$0xff]  ;;  %v69_v1 = vld [vmem:[#allocation5 + $0x10] sm:$0xff]  ;;  %v1997_v6 = vmov 0.0  }
  0x27   :  { %1728 = vmatprep.subr.mxu0 %v70_v0  ;;  %v65_v2 = vld [vmem:[#allocation2] sm:$0xff]  ;;  %v68_v3 = vld [vmem:[#allocation5 + $0x8] sm:$0xff]  ;;  %v67_v4 = vld [vmem:[#allocation5] sm:$0xff]  ;;  %1739 = vmatprep.subr.mxu1 %v1997_v6  ;;  %vm1998_vm1 = vmmov 0   ;;  %s1999_s13 = smov 64   ;;  %s2000_s14 = smov 96  }
  0x28   :  { %1729 = vmatpush3.msra.mxu0 %v70_v0  ;;  %1736 = vmatprep.mubr.msk.f32.mxu0 %vm78_vm0, %v65_v2  ;;  %v66_v5 = vld [vmem:[#allocation2 + $0x8] sm:$0xff]  ;;  %v1654_v7 = vld [vmem:[%s2242_s2] ss:$0 sm:$0xff]  ;;  %s2001_s15 = smov 88   ;;  %s2002_s16 = smov 120   ;;  %vm163_vm2 = vcmask 64512  }
  0x29   :  { %1730 = vmatprep.subr.mxu0 %v69_v1  ;;  %1741 = vmatprep.mubr.msk.f32.mxu1 %vm1998_vm1, %v1997_v6  ;;  %s2003_s2 = smov 80   ;;  %s2004_s17 = smov 112   ;;  %vm840_vm3 = vcmask 130048   ;;  %vm842_vm4 = vcmask 195584  }
  0x2a   :  { %1731 = vmatpush3.msra.mxu0 %v69_v1  ;;  %s2005_s18 = smov 72   ;;  %s2006_s19 = smov 104  }
  0x2b   :  { %1732 = vmatprep.subr.mxu0 %v68_v3  ;;  %s2007_s20 = smov 48   ;;  %s2008_s21 = smov 56  }
  0x2c   :  { %1733 = vmatpush3.msra.mxu0 %v68_v3  ;;  %s2009_s22 = smov 40   ;;  %s2010_s23 = smov 16  }
  0x2d   :  { %1734 = vmatprep.subr.mxu0 %v67_v4  ;;  %s2011_s24 = smov 24   ;;  %s2012_s25 = smov [#allocation9]  }
  0x2e   :  { %1735 = vmatpush3.msra.mxu0 %v67_v4  ;;  %s1637_s28 = sshll.u32 %s2012_s25, 4  ;;  %s1638_s28 = int_to_ptr.vmem [resolvable:$true] %s1637_s28 }
  0x2f   :  { %1737 = vmatmul.mubr.msk.f32.vlgmr.msra.gmra.mxu0 %vm78_vm0, %v66_v5  ;;  %1759 = vmatprep.subr.mxu0 %v1997_v6  ;;  %s1944_s29 = scalar_lea.vmem %s1638_s28, 1024  ;;  %p1949_p2 = scmp.lt.s32.totalorder %s1638_s28, %s1638_s28 }
  0x30   :  { %1761 = vmatprep.mubr.msk.f32.mxu0 %vm1998_vm1, %v1997_v6  ;;  %p1945_p1 = scmp.ne.s32.totalorder %s1638_s28, %s1944_s29  ;;  %p1950_p3 = scmp.lt.s32.totalorder %s1944_s29, %s1944_s29 }
  0x32   :  { %p1951_p4 = por %p1950_p3, %p1949_p2 }
  0x34   :  { %p1952_p5 = pnand %p1951_p4, %p1945_p1 }
  0xef   :  { %v1738_v8 = vpop.f32.mrf.mxu0 }
  0xf0   :  { %v2078_v9 = vadd.f32 %v1738_v8, %v1654_v7 }
  0xf1   :  { %v151_v10 = vpop.f32.mrf.mxu0 }
  0xf2   :  { %v2080_v11 = vadd.f32 %v1654_v7, %v151_v10 }
  0xf4   :  { %250 = vrot.lane.b32.xlu1 %v2080_v11, %s1999_s13  ;;  %161 = vrot.lane.b32.xlu0 %v2080_v11, %s2000_s14 }
  0xf8   :  { %328 = vrot.lane.b32.xlu1 %v2080_v11, %s2001_s15 }
  0xfc   :  { %326 = vrot.lane.b32.xlu1 %v2080_v11, %s2002_s16 }
 0x100   :  { %495 = vrot.lane.b32.xlu1 %v2080_v11, %s2003_s2 }
 0x104   :  { %493 = vrot.lane.b32.xlu1 %v2080_v11, %s2004_s17 }
 0x166   :  { %v251_v12 = vpop.permute.xlu1 %250  ;;  %v162_v13 = vpop.permute.xlu0 %161 }
 0x167   :  { %1740 = vmatpush3.xpose.msk.msra.mxu1 %vm163_vm2, %v162_v13 }
 0x168   :  { %1744 = vmatprep.subr.mxu1 %v1997_v6 }
 0x16a   :  { %v329_v14 = vpop.permute.xlu1 %328  ;;  %1742 = vmatmul.mubr.msk.f32.vlgmr.msra.gmra.mxu1 %vm163_vm2, %v2080_v11 }
 0x16b   :  { %1745 = vmatpush3.msra.mxu1 %v251_v12  ;;  %1746 = vmatprep.mubr.msk.f32.mxu1 %vm1998_vm1, %v1997_v6 }
 0x16c   :  { %1749 = vmatprep.subr.mxu1 %v1997_v6 }
 0x16e   :  { %v327_v15 = vpop.permute.xlu1 %326 }
 0x172   :  { %v496_v16 = vpop.permute.xlu1 %495 }
 0x173   :  { %1760 = vmatpush3.xpose.msk.msra.mxu0 %vm163_vm2, %v496_v16 }
 0x174   :  { %1769 = vmatprep.subr.mxu0 %v1997_v6 }
 0x176   :  { %v494_v17 = vpop.permute.xlu1 %493 }
 0x177   :  { %1762 = vmatmul.mubr.msk.f32.vlgmr.msra.gmra.mxu0 %vm163_vm2, %v494_v17 }
 0x178   :  { %1771 = vmatprep.mubr.msk.f32.mxu0 %vm1998_vm1, %v1997_v6 }
 0x22a   :  { %v234_v18 = vpop.f32.mrf.mxu1 }
 0x22b   :  { %v238_v19 = vsel %vm163_vm2, %v234_v18, -inf }
 0x22c   :  { %239 = vmax.xlane.f32.xlu0 %v238_v19  ;;  %v1743_v20 = vpop.f32.mrf.mxu1 }
 0x237   :  { %v2106_v21 = vpop.f32.mrf.mxu0 }
 0x238   :  { %v571_v23 = vsel %vm163_vm2, %v2106_v21, -inf }
 0x239   :  { %v1763_v22 = vpop.f32.mrf.mxu0 }
 0x242   :  { %662 = vrot.lane.b32.xlu0 %v2080_v11, %s2005_s18 }
 0x246   :  { %1177 = vrot.lane.b32.xlu0 %v2078_v9, %s2004_s17 }
 0x24a   :  { %1344 = vrot.lane.b32.xlu0 %v2078_v9, %s2006_s19 }
 0x269   :  { %572 = vmax.xlane.f32.xlu0 %v571_v23 }
 0x2b5   :  { %v240_v24 = vpop.xlane.xlu0 %239 }
 0x2b6   :  { %v241_v25 = vsub.f32 %v234_v18, %v240_v24 }
 0x2b8   :  { %v242_v26 = vmul.f32 1.442695, %v241_v25 }
 0x2b9   :  { %v663_v27 = vpop.permute.xlu0 %662 }
 0x2ba   :  { %1852 = vpow2.f32 %v242_v26  ;;  %1770 = vmatpush3.xpose.msk.msra.mxu0 %vm163_vm2, %v663_v27 }
 0x2bb   :  { %1779 = vmatprep.subr.mxu0 %v1997_v6 }
 0x2bd   :  { %v1178_v38 = vpop.permute.xlu0 %1177 }
 0x2c1   :  { %v1345_v40 = vpop.permute.xlu0 %1344 }
 0x2c7   :  { %v1853_v28 = vpop.eup %1852 }
 0x2c8   :  { %v244_v29 = vsel %vm163_vm2, %v1853_v28, 0.0 }
 0x2c9   :  { %245 = vadd.xlane.f32.xlu1 %v244_v29 }
 0x2da   :  { %660 = vrot.lane.b32.xlu1 %v2080_v11, %s2006_s19 }
 0x2de   :  { %845 = vrot.lane.b32.xlu1 %v2078_v9, %s2000_s14 }
 0x2e2   :  { %1012 = vrot.lane.b32.xlu1 %v2078_v9, %s2001_s15 }
 0x2e6   :  { %1010 = vrot.lane.b32.xlu1 %v2078_v9, %s2002_s16 }
 0x2ea   :  { %1179 = vrot.lane.b32.xlu1 %v2078_v9, %s2003_s2 }
 0x2ee   :  { %1346 = vrot.lane.b32.xlu1 %v2078_v9, %s2005_s18 }
 0x2f2   :  { %v573_v42 = vpop.xlane.xlu0 %572 }
 0x2f3   :  { %v574_v45 = vsub.f32 %v2106_v21, %v573_v42 }
 0x2f5   :  { %v575_v47 = vmul.f32 1.442695, %v574_v45 }
 0x352   :  { %v246_v30 = vpop.xlane.xlu1 %245 }
 0x353   :  { %1854 = vrcp.f32 %v246_v30 }
 0x354   :  { %1856 = vpow2.f32 %v575_v47 }
 0x356   :  { %v661_v31 = vpop.permute.xlu1 %660 }
 0x357   :  { %1772 = vmatmul.mubr.msk.f32.vlgmr.msra.gmra.mxu0 %vm163_vm2, %v661_v31 }
 0x358   :  { %1781 = vmatprep.mubr.msk.f32.mxu0 %vm1998_vm1, %v1997_v6 }
 0x35a   :  { %v846_v32 = vpop.permute.xlu1 %845 }
 0x35b   :  { %1780 = vmatpush3.xpose.msk.msra.mxu0 %vm163_vm2, %v846_v32 }
 0x35c   :  { %1789 = vmatprep.subr.mxu0 %v1997_v6 }
 0x35e   :  { %v1013_v33 = vpop.permute.xlu1 %1012  ;;  %1782 = vmatmul.mubr.msk.f32.vlgmr.msra.gmra.mxu0 %vm163_vm2, %v2078_v9 }
 0x35f   :  { %1790 = vmatpush3.xpose.msk.msra.mxu0 %vm163_vm2, %v1013_v33  ;;  %1791 = vmatprep.mubr.msk.f32.mxu0 %vm1998_vm1, %v1997_v6 }
 0x360   :  { %v1855_v34 = vpop.eup %1854  ;;  %1799 = vmatprep.subr.mxu0 %v1997_v6 }
 0x361   :  { %v248_v35 = vmul.f32 %v1855_v34, %v1853_v28  ;;  %v1857_v62 = vpop.eup %1856 }
 0x362   :  { %v1011_v36 = vpop.permute.xlu1 %1010  ;;  %v577_v1 = vsel %vm163_vm2, %v1857_v62, 0.0 }
 0x363   :  { %249 = vst.msk [vmem:[#allocation9] sm:$0xff] %vm163_vm2, %v248_v35  ;;  %1747 = vmatmul.mubr.msk.f32.vlgmr.msra.gmra.mxu1 %vm163_vm2, %v248_v35  ;;  %1792 = vmatmul.mubr.msk.f32.vlgmr.msra.gmra.mxu0 %vm163_vm2, %v1011_v36 }
 0x364   :  { %1750 = vmatpush3.xpose.msk.msra.mxu1 %vm163_vm2, %v329_v14  ;;  %1751 = vmatprep.mubr.msk.f32.mxu1 %vm1998_vm1, %v1997_v6 }
 0x365   :  { %1801 = vmatprep.mubr.msk.f32.mxu0 %vm1998_vm1, %v1997_v6  ;;  %1754 = vmatprep.subr.mxu1 %v1997_v6 }
 0x366   :  { %v1180_v37 = vpop.permute.xlu1 %1179 }
 0x367   :  { %1752 = vmatmul.mubr.msk.f32.vlgmr.msra.gmra.mxu1 %vm163_vm2, %v327_v15  ;;  %1800 = vmatpush3.xpose.msk.msra.mxu0 %vm163_vm2, %v1180_v37 }
 0x368   :  { %1809 = vmatprep.subr.mxu0 %v1997_v6  ;;  %1756 = vmatprep.mubr.msk.f32.mxu1 %vm1998_vm1, %v1997_v6 }
 0x36a   :  { %v1347_v39 = vpop.permute.xlu1 %1346  ;;  %1802 = vmatmul.mubr.msk.f32.vlgmr.msra.gmra.mxu0 %vm163_vm2, %v1178_v38 }
 0x36b   :  { %1810 = vmatpush3.xpose.msk.msra.mxu0 %vm163_vm2, %v1347_v39  ;;  %1811 = vmatprep.mubr.msk.f32.mxu0 %vm1998_vm1, %v1997_v6 }
 0x36e   :  { %1812 = vmatmul.mubr.msk.f32.vlgmr.msra.gmra.mxu0 %vm163_vm2, %v1345_v40 }
 0x417   :  { %v734_v41 = vpop.f32.mrf.mxu0 }
 0x418   :  { %v738_v43 = vsel %vm163_vm2, %v734_v41, -inf }
 0x419   :  { %739 = vmax.xlane.f32.xlu0 %v738_v43  ;;  %v1773_v44 = vpop.f32.mrf.mxu0 }
 0x41e   :  { %v917_v46 = vpop.f32.mrf.mxu0 }
 0x41f   :  { %v921_v59 = vsel %vm163_vm2, %v917_v46, -inf }
 0x420   :  { %v1783_v48 = vpop.f32.mrf.mxu0 }
 0x423   :  { %v2158_v49 = vpop.f32.mrf.mxu1  ;;  %v1084_v50 = vpop.f32.mrf.mxu0 }
 0x424   :  { %v1088_v51 = vsel %vm163_vm2, %v1084_v50, -inf }
 0x425   :  { %1089 = vmax.xlane.f32.xlu0 %v1088_v51  ;;  %v1748_v52 = vpop.f32.mrf.mxu1  ;;  %v1793_v53 = vpop.f32.mrf.mxu0 }
 0x427   :  { %v2161_v54 = vpop.f32.mrf.mxu1 }
 0x428   :  { %v404_v55 = vsel %vm163_vm2, %v2161_v54, -inf }
 0x429   :  { %405 = vmax.xlane.f32.xlu1 %v404_v55  ;;  %v1753_v56 = vpop.f32.mrf.mxu1 }
 0x42a   :  { %v1251_v57 = vpop.f32.mrf.mxu0 }
 0x42b   :  { %v1255_v0 = vsel %vm163_vm2, %v1251_v57, -inf }
 0x42c   :  { %v1803_v58 = vpop.f32.mrf.mxu0 }
 0x42d   :  { %922 = vmax.xlane.f32.xlu1 %v921_v59 }
 0x42e   :  { %v1418_v60 = vpop.f32.mrf.mxu0 }
 0x42f   :  { %v1422_v61 = vsel %vm163_vm2, %v1418_v60, -inf }
 0x430   :  { %1423 = vmax.xlane.f32.xlu0 %v1422_v61  ;;  %v1813_v63 = vpop.f32.mrf.mxu0 }
 0x431   :  { %1256 = vmax.xlane.f32.xlu1 %v1255_v0 }
 0x434   :  { %578 = vadd.xlane.f32.xlu0 %v577_v1  ;;  %v1529_v1 = vld [vmem:[#allocation7 + $0x18] sm:$0xff] }
 0x435   :  { %1819 = vmatprep.subr.mxu0 %v1529_v1 }
 0x436   :  { %1820 = vmatpush3.msra.mxu0 %v1529_v1 }
 0x4a2   :  { %v740_v2 = vpop.xlane.xlu0 %739 }
 0x4a3   :  { %v741_v3 = vsub.f32 %v734_v41, %v740_v2  ;;  %v1528_v2 = vld [vmem:[#allocation7 + $0x10] sm:$0xff] }
 0x4a4   :  { %1821 = vmatprep.subr.mxu0 %v1528_v2 }
 0x4a5   :  { %v742_v4 = vmul.f32 1.442695, %v741_v3  ;;  %1822 = vmatpush3.msra.mxu0 %v1528_v2 }
 0x4a7   :  { %1858 = vpow2.f32 %v742_v4 }
 0x4ae   :  { %v1090_v5 = vpop.xlane.xlu0 %1089 }
 0x4af   :  { %v1091_v7 = vsub.f32 %v1084_v50, %v1090_v5  ;;  %v1527_v5 = vld [vmem:[#allocation7 + $0x8] sm:$0xff] }
 0x4b0   :  { %1823 = vmatprep.subr.mxu0 %v1527_v5 }
 0x4b1   :  { %v1092_v8 = vmul.f32 1.442695, %v1091_v7  ;;  %v1526_v7 = vld [vmem:[#allocation7] sm:$0xff]  ;;  %1824 = vmatpush3.msra.mxu0 %v1527_v5 }
 0x4b2   :  { %v406_v10 = vpop.xlane.xlu1 %405  ;;  %1825 = vmatprep.subr.mxu0 %v1526_v7 }
 0x4b3   :  { %1860 = vpow2.f32 %v1092_v8  ;;  %v407_v34 = vsub.f32 %v2161_v54, %v406_v10  ;;  %1826 = vmatpush3.msra.mxu0 %v1526_v7 }
 0x4b4   :  { %v1859_v12 = vpop.eup %1858 }
 0x4b5   :  { %v744_v13 = vsel %vm163_vm2, %v1859_v12, 0.0  ;;  %v408_v35 = vmul.f32 1.442695, %v407_v34 }
 0x4b6   :  { %745 = vadd.xlane.f32.xlu1 %v744_v13  ;;  %v923_v14 = vpop.xlane.xlu1 %922 }
 0x4b7   :  { %v924_v15 = vsub.f32 %v917_v46, %v923_v14 }
 0x4b9   :  { %v925_v16 = vmul.f32 1.442695, %v924_v15  ;;  %v1424_v17 = vpop.xlane.xlu0 %1423 }
 0x4ba   :  { %v1425_v18 = vsub.f32 %v1418_v60, %v1424_v17  ;;  %v1257_v19 = vpop.xlane.xlu1 %1256 }
 0x4bb   :  { %1862 = vpow2.f32 %v925_v16  ;;  %v1258_v20 = vsub.f32 %v1251_v57, %v1257_v19 }
 0x4bc   :  { %v1426_v21 = vmul.f32 1.442695, %v1425_v18 }
 0x4bd   :  { %v1259_v22 = vmul.f32 1.442695, %v1258_v20  ;;  %v579_v23 = vpop.xlane.xlu0 %578 }
 0x4be   :  { %1864 = vpow2.f32 %v1426_v21 }
 0x4bf   :  { %1866 = vpow2.f32 %v1259_v22 }
 0x4c0   :  { %v1861_v24 = vpop.eup %1860  ;;  %1868 = vrcp.f32 %v579_v23 }
 0x4c1   :  { %v1094_v25 = vsel %vm163_vm2, %v1861_v24, 0.0  ;;  %1870 = vpow2.f32 %v408_v35 }
 0x4c2   :  { %1095 = vadd.xlane.f32.xlu1 %v1094_v25 }
 0x4c8   :  { %v1863_v26 = vpop.eup %1862 }
 0x4c9   :  { %v927_v27 = vsel %vm163_vm2, %v1863_v26, 0.0 }
 0x4ca   :  { %928 = vadd.xlane.f32.xlu0 %v927_v27 }
 0x4cb   :  { %v1865_v28 = vpop.eup %1864 }
 0x4cc   :  { %v1867_v29 = vpop.eup %1866  ;;  %v1428_v30 = vsel %vm163_vm2, %v1865_v28, 0.0 }
 0x4cd   :  { %v1869_v31 = vpop.eup %1868  ;;  %1429 = vadd.xlane.f32.xlu1 %v1428_v30  ;;  %v1261_v32 = vsel %vm163_vm2, %v1867_v29, 0.0 }
 0x4ce   :  { %1262 = vadd.xlane.f32.xlu0 %v1261_v32  ;;  %v581_v33 = vmul.f32 %v1869_v31, %v1857_v62  ;;  %v1871_v36 = vpop.eup %1870 }
 0x4cf   :  { %v410_v37 = vsel %vm163_vm2, %v1871_v36, 0.0 }
 0x4d0   :  { %583 = vst.msk [vmem:[#allocation9 + $0x10] sm:$0xff] %vm163_vm2, %v581_v33 }
 0x4de   :  { %584 = vrot.lane.b32.xlu1 %v2080_v11, %s2007_s20 }
 0x4e4   :  { %417 = vrot.lane.b32.xlu0 %v2080_v11, %s2008_s21 }
 0x4e8   :  { %934 = vrot.lane.b32.xlu0 %v2078_v9, %s1999_s13 }
 0x4ec   :  { %1268 = vrot.lane.b32.xlu0 %v2078_v9, %s2007_s20 }
 0x502   :  { %411 = vadd.xlane.f32.xlu1 %v410_v37 }
 0x513   :  { %751 = vrot.lane.b32.xlu1 %v2080_v11, %s2009_s22 }
 0x517   :  { %1101 = vrot.lane.b32.xlu1 %v2078_v9, %s2008_s21 }
 0x51b   :  { %1435 = vrot.lane.b32.xlu1 %v2078_v9, %s2009_s22 }
 0x53f   :  { %v746_v38 = vpop.xlane.xlu1 %745 }
 0x540   :  { %1872 = vrcp.f32 %v746_v38 }
 0x54b   :  { %v1096_v39 = vpop.xlane.xlu1 %1095 }
 0x54c   :  { %1874 = vrcp.f32 %v1096_v39 }
 0x54d   :  { %v1873_v40 = vpop.eup %1872 }
 0x54e   :  { %v748_v41 = vmul.f32 %v1873_v40, %v1859_v12 }
 0x550   :  { %750 = vst.msk [vmem:[#allocation9 + $0x18] sm:$0xff] %vm163_vm2, %v748_v41 }
 0x553   :  { %v929_v42 = vpop.xlane.xlu0 %928 }
 0x554   :  { %1876 = vrcp.f32 %v929_v42 }
 0x556   :  { %v1430_v43 = vpop.xlane.xlu1 %1429 }
 0x557   :  { %1878 = vrcp.f32 %v1430_v43  ;;  %v1263_v44 = vpop.xlane.xlu0 %1262 }
 0x558   :  { %1880 = vrcp.f32 %v1263_v44 }
 0x559   :  { %v1875_v45 = vpop.eup %1874 }
 0x55a   :  { %v1098_v11 = vmul.f32 %v1875_v45, %v1861_v24  ;;  %v585_v53 = vpop.permute.xlu1 %584 }
 0x55b   :  { %v418_v46 = vpop.permute.xlu0 %417 }
 0x55c   :  { %1755 = vmatpush3.msra.mxu1 %v418_v46  ;;  %1100 = vst.msk [vmem:[#allocation9 + $0x28] sm:$0xff] %vm163_vm2, %v1098_v11 }
 0x55d   :  { %1764 = vmatprep.subr.mxu1 %v1997_v6 }
 0x55f   :  { %v935_v58 = vpop.permute.xlu0 %934 }
 0x561   :  { %v1877_v9 = vpop.eup %1876 }
 0x562   :  { %v931_v47 = vmul.f32 %v1877_v9, %v1863_v26 }
 0x563   :  { %v1269_v60 = vpop.permute.xlu0 %1268 }
 0x564   :  { %v1879_v48 = vpop.eup %1878  ;;  %933 = vst.msk [vmem:[#allocation9 + $0x20] sm:$0xff] %vm163_vm2, %v931_v47 }
 0x565   :  { %v1881_v50 = vpop.eup %1880  ;;  %v1432_v51 = vmul.f32 %v1879_v48, %v1865_v28 }
 0x566   :  { %v1265_v52 = vmul.f32 %v1881_v50, %v1867_v29 }
 0x567   :  { %1434 = vst.msk [vmem:[#allocation9 + $0x38] sm:$0xff] %vm163_vm2, %v1432_v51 }
 0x568   :  { %1267 = vst.msk [vmem:[#allocation9 + $0x30] sm:$0xff] %vm163_vm2, %v1265_v52 }
 0x58b   :  { %v412_v54 = vpop.xlane.xlu1 %411 }
 0x58c   :  { %1882 = vrcp.f32 %v412_v54 }
 0x58f   :  { %v752_v57 = vpop.permute.xlu1 %751 }
 0x593   :  { %v1102_v59 = vpop.permute.xlu1 %1101 }
 0x597   :  { %v1436_v61 = vpop.permute.xlu1 %1435 }
 0x599   :  { %v1883_v55 = vpop.eup %1882 }
 0x59a   :  { %v414_v56 = vmul.f32 %v1883_v55, %v1871_v36 }
 0x59c   :  { %416 = vst.msk [vmem:[#allocation9 + $0x8] sm:$0xff] %vm163_vm2, %v414_v56  ;;  %1757 = vmatmul.mubr.msk.f32.vlgmr.msra.gmra.mxu1 %vm163_vm2, %v414_v56 }
 0x59d   :  { %1765 = vmatpush3.msra.mxu1 %v585_v53  ;;  %1766 = vmatprep.mubr.msk.f32.mxu1 %vm1998_vm1, %v1997_v6 }
 0x59e   :  { %1774 = vmatprep.subr.mxu1 %v1997_v6 }
 0x5a0   :  { %1767 = vmatmul.mubr.msk.f32.vlgmr.msra.gmra.mxu1 %vm163_vm2, %v581_v33 }
 0x5a1   :  { %1775 = vmatpush3.msra.mxu1 %v752_v57  ;;  %1776 = vmatprep.mubr.msk.f32.mxu1 %vm1998_vm1, %v1997_v6 }
 0x5a2   :  { %1784 = vmatprep.subr.mxu1 %v1997_v6 }
 0x5a4   :  { %1777 = vmatmul.mubr.msk.f32.vlgmr.msra.gmra.mxu1 %vm163_vm2, %v748_v41 }
 0x5a5   :  { %1785 = vmatpush3.msra.mxu1 %v935_v58  ;;  %1786 = vmatprep.mubr.msk.f32.mxu1 %vm1998_vm1, %v1997_v6 }
 0x5a6   :  { %1794 = vmatprep.subr.mxu1 %v1997_v6 }
 0x5a8   :  { %1787 = vmatmul.mubr.msk.f32.vlgmr.msra.gmra.mxu1 %vm163_vm2, %v931_v47 }
 0x5a9   :  { %1795 = vmatpush3.msra.mxu1 %v1102_v59  ;;  %1796 = vmatprep.mubr.msk.f32.mxu1 %vm1998_vm1, %v1997_v6 }
 0x5aa   :  { %1804 = vmatprep.subr.mxu1 %v1997_v6 }
 0x5ac   :  { %1797 = vmatmul.mubr.msk.f32.vlgmr.msra.gmra.mxu1 %vm163_vm2, %v1098_v11 }
 0x5ad   :  { %1805 = vmatpush3.msra.mxu1 %v1269_v60  ;;  %1806 = vmatprep.mubr.msk.f32.mxu1 %vm1998_vm1, %v1997_v6 }
 0x5ae   :  { %1814 = vmatprep.subr.mxu1 %v1997_v6 }
 0x5b0   :  { %1807 = vmatmul.mubr.msk.f32.vlgmr.msra.gmra.mxu1 %vm163_vm2, %v1265_v52 }
 0x5b1   :  { %1815 = vmatpush3.msra.mxu1 %v1436_v61  ;;  %1816 = vmatprep.mubr.msk.f32.mxu1 %vm1998_vm1, %v1997_v6 }
 0x5b4   :  { %1817 = vmatmul.mubr.msk.f32.vlgmr.msra.gmra.mxu1 %vm163_vm2, %v1432_v51 }
 0x65c   :  { %v489_v62 = vpop.f32.mrf.mxu1 }
 0x65d   :  { %828 = vrot.lane.b32.xlu0 %v489_v62, %s1995_s27 }
 0x65e   :  { %v1758_v63 = vpop.f32.mrf.mxu1 }
 0x660   :  { %v656_v0 = vpop.f32.mrf.mxu1 }
 0x661   :  { %832 = vrot.lane.b32.xlu1 %v656_v0, %s2010_s23 }
 0x662   :  { %v1768_v3 = vpop.f32.mrf.mxu1 }
 0x664   :  { %v823_v4 = vpop.f32.mrf.mxu1 }
 0x665   :  { %836 = vrot.lane.b32.xlu1 %v823_v4, %s2011_s24 }
 0x666   :  { %v1778_v6 = vpop.f32.mrf.mxu1 }
 0x668   :  { %v1006_v8 = vpop.f32.mrf.mxu1 }
 0x66a   :  { %v1788_v10 = vpop.f32.mrf.mxu1 }
 0x66c   :  { %v1173_v12 = vpop.f32.mrf.mxu1 }
 0x66d   :  { %1512 = vrot.lane.b32.xlu0 %v1173_v12, %s1995_s27 }
 0x66e   :  { %v1798_v13 = vpop.f32.mrf.mxu1 }
 0x670   :  { %v1340_v14 = vpop.f32.mrf.mxu1 }
 0x671   :  { %1516 = vrot.lane.b32.xlu0 %v1340_v14, %s2010_s23 }
 0x672   :  { %v1808_v15 = vpop.f32.mrf.mxu1 }
 0x674   :  { %v1507_v16 = vpop.f32.mrf.mxu1 }
 0x675   :  { %1520 = vrot.lane.b32.xlu1 %v1507_v16, %s2011_s24 }
 0x676   :  { %v1818_v17 = vpop.f32.mrf.mxu1 }
 0x6cf   :  { %v829_v18 = vpop.permute.xlu0 %828 }
 0x6d0   :  { %v839_v20 = vsel %vm163_vm2, %v2158_v49, %v829_v18 }
 0x6d3   :  { %v833_v19 = vpop.permute.xlu1 %832 }
 0x6d4   :  { %v841_v21 = vsel %vm840_vm3, %v839_v20, %v833_v19 }
 0x6d7   :  { %v837_v22 = vpop.permute.xlu1 %836 }
 0x6d8   :  { %v843_v23 = vsel %vm842_vm4, %v841_v21, %v837_v22 }
 0x6d9   :  { %1827 = vmatprep.mubr.msk.f32.mxu0 %vm78_vm0, %v843_v23 }
 0x6df   :  { %v1513_v24 = vpop.permute.xlu0 %1512 }
 0x6e0   :  { %v1523_v26 = vsel %vm163_vm2, %v1006_v8, %v1513_v24 }
 0x6e3   :  { %v1517_v25 = vpop.permute.xlu0 %1516 }
 0x6e4   :  { %v1524_v27 = vsel %vm840_vm3, %v1523_v26, %v1517_v25 }
 0x6e7   :  { %v1521_v28 = vpop.permute.xlu1 %1520 }
 0x6e8   :  { %v1525_v29 = vsel %vm842_vm4, %v1524_v27, %v1521_v28 }
 0x6e9   :  { %1828 = vmatmul.mubr.msk.f32.vlgmr.msra.gmra.mxu0 %vm78_vm0, %v1525_v29 }
 0x6ea   :  { %1955 = shalt.err (!%p1952_p5)
}
 0x6eb   :  { %1643 = dma.vmem_to_hbm [thread:$0]  %s1638_s28, 1024, %s2246_s6, [#allocation10], %s1994_s26, %s1994_s26, %s1995_s27  }
 0x6ec   :  { %v1681_v49 = vld [vmem:[%s2244_s4] ss:$0 sm:$0xff]  ;;  %s2013_s10 = smov [#allocation8]  }
 0x6ed   :  { %s1625_s11 = sshll.u32 %s2013_s10, 4  ;;  %s1626_s11 = int_to_ptr.vmem [resolvable:$true] %s1625_s11 }
 0x6ee   :  { %s1964_s1 = scalar_lea.vmem %s1626_s11, 256  ;;  %p1969_p7 = scmp.lt.s32.totalorder %s1626_s11, %s1626_s11 }
 0x6ef   :  { %p1965_p6 = scmp.ne.s32.totalorder %s1626_s11, %s1964_s1  ;;  %p1970_p8 = scmp.lt.s32.totalorder %s1964_s1, %s1964_s1 }
 0x6f1   :  { %p1971_p9 = por %p1970_p8, %p1969_p7 }
 0x6f3   :  { %p1972_p10 = pnand %p1971_p9, %p1965_p6 }
 0x7a9   :  { %v1829_v30 = vpop.f32.mrf.mxu0 }
 0x7aa   :  { %v1615_v31 = vadd.f32 %v1829_v30, %v1681_v49 }
 0x7ab   :  { %v1609_v32 = vpop.f32.mrf.mxu0 }
 0x7ac   :  { %1619 = vst.msk [vmem:[#allocation8 + $0x8] sm:$0xff] %vm78_vm0, %v1615_v31  ;;  %v1610_v33 = vadd.f32 %v1681_v49, %v1609_v32 }
 0x7ae   :  { %1618 = vst.msk [vmem:[#allocation8] sm:$0xff] %vm78_vm0, %v1610_v33 }
 0x7af   :  { %1975 = shalt.err (!%p1972_p10)
}
 0x7b0   :  { %1631 = dma.vmem_to_hbm [thread:$0]  %s1626_s11, 256, %s2245_s5, [#allocation4], %s1994_s26, %s1994_s26, %s1995_s27  }
 0x7b1   :  { %1988 = dma.done.wait [#allocation4], 256  }
 0x7b2   :  { %1989 = vsyncadd [#allocation4], 4294967040 }
 0x7b3   :  { %1990 = dma.done.wait [#allocation10], 1024  }
 0x7b4   :  { %1991 = vsyncadd [#allocation10], 4294966272 }
 0x7b5   :  { %1650 = vsyncpa [#allocation3], 1 }
 0x7b6   :  { %1651 = vsyncpa [#allocation6], 1 }
 0x7b7   :  { %1652 = vsyncpa [#allocation4], 1 }
 0x7b8   :  { %1653 = vsyncpa [#allocation10], 1 }

</bundles_post_ra>
